<compile_context>
chip_gen: v7x
topology: tpu7x:2x2x1
jax: 0.10.0
libtpu: 0.0.40
codegen_flags: <defaults>
</compile_context>

<pallas_src>
import jax
import jax.numpy as jnp
from jax import lax
from jax.experimental import pallas as pl
from jax.experimental.pallas import tpu as pltpu


def _round_up(x, m):
    return ((x + m - 1) // m) * m


def _make_conv_relu_kernel(shifts, lout):
    """Kernel factory: `shifts` are the static lane offsets (one per conv tap)."""

    def kernel(x_ref, w_ref, o_ref):
        # x_ref: (1, Cin_pad, L)          flattened zero-padded input slab (one image)
        # w_ref: (T, Cout_tile, Cin_pad)  per-tap weight matrices (VMEM-resident)
        # o_ref: (1, Cout_tile, lout)     lane-dense output block (lout % 128 == 0)
        tcout = w_ref.shape[1]
        acc = jnp.zeros((tcout, lout), jnp.float32)
        for t, s in enumerate(shifts):
            # Shifted window of the padded image: one MXU matmul per conv tap.
            xs = x_ref[0, :, pl.ds(s, lout)]                  # (Cin_pad, lout)
            acc = acc + jnp.dot(w_ref[t], xs,
                                preferred_element_type=jnp.float32)
        o_ref[0] = jnp.maximum(acc, 0.0).astype(o_ref.dtype)  # fused ReLU epilogue

    return kernel


def basic_forward(x_nchw, weight_oihw, padding, *, compute_dtype=None,
                  vmem_budget_bytes=24 << 20):
    """Pallas implementation of Basic.forward (conv2d stride=1, no bias, + ReLU).

    x_nchw:      (N, Cin, H, W)       NCHW, PyTorch layout
    weight_oihw: (Cout, Cin, KH, KW)  PyTorch conv weight layout
    compute_dtype: optionally jnp.bfloat16 for the MXU inputs (f32 accumulation kept);
                   default None keeps full f32 (PyTorch-exact).
    returns:     (N, Cout, Hout, Wout) in x's dtype.
    """
    N, Cin, H, W = x_nchw.shape
    Cout, _, KH, KW = weight_oihw.shape
    Hp, Wp = H + 2 * padding, W + 2 * padding
    Hout, Wout = Hp - KH + 1, Wp - KW + 1
    T = KH * KW

    out_dtype = jnp.dtype(x_nchw.dtype)
    in_dtype = jnp.dtype(compute_dtype) if compute_dtype is not None else out_dtype
    itm = in_dtype.itemsize

    # Contraction dim (Cin) padded to a whole sublane quantum: 8 (f32) / 16 (bf16).
    sub = 8 * (4 // itm)
    cin_p = _round_up(Cin, sub)

    LANE = 128
    lout = _round_up(Hout * Wp, LANE)                 # lane-dense output length
    max_shift = (KH - 1) * Wp + (KW - 1)              # largest tap offset
    L = _round_up(lout + max_shift, LANE)             # input slab lane length

    # --- wrapper glue: NO im2col.  Zero-pad spatially + pad channels, flatten HW. ---
    x_pad = jnp.pad(x_nchw, ((0, 0), (0, cin_p - Cin),
                             (padding, padding), (padding, padding)))
    x_slab = x_pad.reshape(N, cin_p, Hp * Wp)
    x_slab = jnp.pad(x_slab, ((0, 0), (0, 0), (0, L - Hp * Wp))).astype(in_dtype)

    # Per-tap weight matrices (T, Cout, Cin_pad), tap order (kh, kw) major->minor.
    w_taps = jnp.transpose(weight_oihw, (2, 3, 0, 1)).reshape(T, Cout, Cin)
    w_taps = jnp.pad(w_taps, ((0, 0), (0, 0), (0, cin_p - Cin))).astype(in_dtype)

    # --- VMEM-budgeted Cout tile (multiple of 8 that divides Cout) + vmem limit. ---
    def vmem_bytes(tc):
        return (2 * cin_p * L * itm                       # double-buffered input block
                + 2 * T * tc * cin_p * itm                # weight block
                + 2 * tc * lout * out_dtype.itemsize      # double-buffered output block
                + tc * lout * 4)                          # f32 accumulator
    candidates = [c for c in range(Cout, 0, -1)
                  if Cout % c == 0 and (c % 8 == 0 or c == Cout)]
    tcout = next((c for c in candidates if vmem_bytes(c) <= vmem_budget_bytes),
                 candidates[-1])
    vmem_limit = int(min(48 << 20, max(32 << 20, 2 * vmem_bytes(tcout))))

    shifts = tuple(kh * Wp + kw for kh in range(KH) for kw in range(KW))
    kernel = _make_conv_relu_kernel(shifts, lout)

    grid = (N, Cout // tcout)   # both "parallel": >= 2 blocks shards across v7x's 2 TCs

    cost = pl.CostEstimate(
        flops=2 * N * T * Cout * cin_p * lout,
        transcendentals=0,
        bytes_accessed=int(x_slab.size * itm + w_taps.size * itm
                           + N * Cout * lout * out_dtype.itemsize))

    out_flat = pl.pallas_call(
        kernel,
        out_shape=jax.ShapeDtypeStruct((N, Cout, lout), out_dtype),
        grid=grid,
        in_specs=[
            pl.BlockSpec((1, cin_p, L), lambda n, c: (n, 0, 0)),
            pl.BlockSpec((T, tcout, cin_p), lambda n, c: (0, c, 0)),  # weights resident
        ],
        out_specs=pl.BlockSpec((1, tcout, lout), lambda n, c: (n, c, 0)),
        compiler_params=pltpu.CompilerParams(
            dimension_semantics=("parallel", "parallel"),
            vmem_limit_bytes=vmem_limit),
        cost_estimate=cost,
    )(x_slab, w_taps)

    # Crop lane padding, split flat -> (Hout, W_pad), drop the garbage columns wo >= Wout.
    out = out_flat[:, :, :Hout * Wp].reshape(N, Cout, Hout, Wp)[:, :, :, :Wout]
    return out


if __name__ == "__main__":
    # Module config: Basic(in_planes=4, out_planes=8, kernel_size=3, padding=1, bias=False)
    in_planes, out_planes, kernel_size, padding = 4, 8, 3, 1
    N, Hs, Ws = 2, 16, 16

    key = jax.random.PRNGKey(0)
    kx, kw = jax.random.split(key)
    x = jax.random.normal(kx, (N, in_planes, Hs, Ws), dtype=jnp.float32)
    # Deterministic weight init (shape matches nn.Conv2d weight: OIHW).
    weight = 0.1 * jax.random.normal(
        kw, (out_planes, in_planes, kernel_size, kernel_size), dtype=jnp.float32)

    out = basic_forward(x, weight, padding)
    out = jax.block_until_ready(out)

    # Sanity check against XLA's conv (same semantics as torch Conv2d + ReLU).
    ref = lax.conv_general_dilated(
        x, weight, window_strides=(1, 1),
        padding=((padding, padding), (padding, padding)),
        dimension_numbers=("NCHW", "OIHW", "NCHW"))
    ref = jnp.maximum(ref, 0.0)
    assert out.shape == (N, out_planes, Hs, Ws)
    assert jnp.allclose(out, ref, atol=1e-4, rtol=1e-4), \
        float(jnp.max(jnp.abs(out - ref)))

    print("KERNEL_OK")
</pallas_src>

<mosaic_0001>
module attributes {stable_mosaic.version = 11 : i64} {
  func.func @kernel(%arg0: i32, %arg1: i32, %arg2: memref<1x8x512xf32, #tpu.memory_space<vmem>>, %arg3: memref<9x8x8xf32, #tpu.memory_space<vmem>>, %arg4: memref<1x8x384xf32, #tpu.memory_space<vmem>>) attributes {dimension_semantics = [#tpu.dimension_semantics<parallel>, #tpu.dimension_semantics<parallel>], iteration_bounds = array<i64: 2, 1>, scalar_prefetch = 0 : i64, scratch_operands = 0 : i64, tpu.core_type = #tpu.core_type<tc>, window_params = [{transform_indices = @transform_0, window_bounds = array<i64: 1, 8, 512>}, {transform_indices = @transform_1, window_bounds = array<i64: 9, 8, 8>}, {transform_indices = @transform_2, window_bounds = array<i64: 1, 8, 384>}]} {
    %cst = arith.constant 0.000000e+00 : f32
    %0 = vector.broadcast %cst : f32 to vector<8x384xf32>
    %c0 = arith.constant 0 : index
    %c0_0 = arith.constant 0 : index
    %c0_1 = arith.constant 0 : index
    %1 = vector.load %arg2[%c0, %c0_0, %c0_1] : memref<1x8x512xf32, #tpu.memory_space<vmem>>, vector<1x8x384xf32>
    %2 = vector.shape_cast %1 : vector<1x8x384xf32> to vector<8x384xf32>
    %c0_2 = arith.constant 0 : index
    %c0_3 = arith.constant 0 : index
    %c0_4 = arith.constant 0 : index
    %3 = vector.load %arg3[%c0_2, %c0_3, %c0_4] : memref<9x8x8xf32, #tpu.memory_space<vmem>>, vector<1x8x8xf32>
    %4 = vector.shape_cast %3 : vector<1x8x8xf32> to vector<8x8xf32>
    %cst_5 = arith.constant dense<0.000000e+00> : vector<8x384xf32>
    %5 = tpu.matmul %4, %2, %cst_5 {dimension_numbers = #tpu.dot_dimension_numbers<[1], [0], [0], [1], [0, 0, 1, 1], [], []>} : vector<8x8xf32>, vector<8x384xf32>, vector<8x384xf32> -> vector<8x384xf32>
    %6 = arith.addf %0, %5 : vector<8x384xf32>
    %c0_6 = arith.constant 0 : index
    %c0_7 = arith.constant 0 : index
    %c1 = arith.constant 1 : index
    %7 = vector.load %arg2[%c0_6, %c0_7, %c1] : memref<1x8x512xf32, #tpu.memory_space<vmem>>, vector<1x8x384xf32>
    %8 = vector.shape_cast %7 : vector<1x8x384xf32> to vector<8x384xf32>
    %c1_8 = arith.constant 1 : index
    %c0_9 = arith.constant 0 : index
    %c0_10 = arith.constant 0 : index
    %9 = vector.load %arg3[%c1_8, %c0_9, %c0_10] : memref<9x8x8xf32, #tpu.memory_space<vmem>>, vector<1x8x8xf32>
    %10 = vector.shape_cast %9 : vector<1x8x8xf32> to vector<8x8xf32>
    %cst_11 = arith.constant dense<0.000000e+00> : vector<8x384xf32>
    %11 = tpu.matmul %10, %8, %cst_11 {dimension_numbers = #tpu.dot_dimension_numbers<[1], [0], [0], [1], [0, 0, 1, 1], [], []>} : vector<8x8xf32>, vector<8x384xf32>, vector<8x384xf32> -> vector<8x384xf32>
    %12 = arith.addf %6, %11 : vector<8x384xf32>
    %c0_12 = arith.constant 0 : index
    %c0_13 = arith.constant 0 : index
    %c2 = arith.constant 2 : index
    %13 = vector.load %arg2[%c0_12, %c0_13, %c2] : memref<1x8x512xf32, #tpu.memory_space<vmem>>, vector<1x8x384xf32>
    %14 = vector.shape_cast %13 : vector<1x8x384xf32> to vector<8x384xf32>
    %c2_14 = arith.constant 2 : index
    %c0_15 = arith.constant 0 : index
    %c0_16 = arith.constant 0 : index
    %15 = vector.load %arg3[%c2_14, %c0_15, %c0_16] : memref<9x8x8xf32, #tpu.memory_space<vmem>>, vector<1x8x8xf32>
    %16 = vector.shape_cast %15 : vector<1x8x8xf32> to vector<8x8xf32>
    %cst_17 = arith.constant dense<0.000000e+00> : vector<8x384xf32>
    %17 = tpu.matmul %16, %14, %cst_17 {dimension_numbers = #tpu.dot_dimension_numbers<[1], [0], [0], [1], [0, 0, 1, 1], [], []>} : vector<8x8xf32>, vector<8x384xf32>, vector<8x384xf32> -> vector<8x384xf32>
    %18 = arith.addf %12, %17 : vector<8x384xf32>
    %c0_18 = arith.constant 0 : index
    %c0_19 = arith.constant 0 : index
    %c18 = arith.constant 18 : index
    %19 = vector.load %arg2[%c0_18, %c0_19, %c18] : memref<1x8x512xf32, #tpu.memory_space<vmem>>, vector<1x8x384xf32>
    %20 = vector.shape_cast %19 : vector<1x8x384xf32> to vector<8x384xf32>
    %c3 = arith.constant 3 : index
    %c0_20 = arith.constant 0 : index
    %c0_21 = arith.constant 0 : index
    %21 = vector.load %arg3[%c3, %c0_20, %c0_21] : memref<9x8x8xf32, #tpu.memory_space<vmem>>, vector<1x8x8xf32>
    %22 = vector.shape_cast %21 : vector<1x8x8xf32> to vector<8x8xf32>
    %cst_22 = arith.constant dense<0.000000e+00> : vector<8x384xf32>
    %23 = tpu.matmul %22, %20, %cst_22 {dimension_numbers = #tpu.dot_dimension_numbers<[1], [0], [0], [1], [0, 0, 1, 1], [], []>} : vector<8x8xf32>, vector<8x384xf32>, vector<8x384xf32> -> vector<8x384xf32>
    %24 = arith.addf %18, %23 : vector<8x384xf32>
    %c0_23 = arith.constant 0 : index
    %c0_24 = arith.constant 0 : index
    %c19 = arith.constant 19 : index
    %25 = vector.load %arg2[%c0_23, %c0_24, %c19] : memref<1x8x512xf32, #tpu.memory_space<vmem>>, vector<1x8x384xf32>
    %26 = vector.shape_cast %25 : vector<1x8x384xf32> to vector<8x384xf32>
    %c4 = arith.constant 4 : index
    %c0_25 = arith.constant 0 : index
    %c0_26 = arith.constant 0 : index
    %27 = vector.load %arg3[%c4, %c0_25, %c0_26] : memref<9x8x8xf32, #tpu.memory_space<vmem>>, vector<1x8x8xf32>
    %28 = vector.shape_cast %27 : vector<1x8x8xf32> to vector<8x8xf32>
    %cst_27 = arith.constant dense<0.000000e+00> : vector<8x384xf32>
    %29 = tpu.matmul %28, %26, %cst_27 {dimension_numbers = #tpu.dot_dimension_numbers<[1], [0], [0], [1], [0, 0, 1, 1], [], []>} : vector<8x8xf32>, vector<8x384xf32>, vector<8x384xf32> -> vector<8x384xf32>
    %30 = arith.addf %24, %29 : vector<8x384xf32>
    %c0_28 = arith.constant 0 : index
    %c0_29 = arith.constant 0 : index
    %c20 = arith.constant 20 : index
    %31 = vector.load %arg2[%c0_28, %c0_29, %c20] : memref<1x8x512xf32, #tpu.memory_space<vmem>>, vector<1x8x384xf32>
    %32 = vector.shape_cast %31 : vector<1x8x384xf32> to vector<8x384xf32>
    %c5 = arith.constant 5 : index
    %c0_30 = arith.constant 0 : index
    %c0_31 = arith.constant 0 : index
    %33 = vector.load %arg3[%c5, %c0_30, %c0_31] : memref<9x8x8xf32, #tpu.memory_space<vmem>>, vector<1x8x8xf32>
    %34 = vector.shape_cast %33 : vector<1x8x8xf32> to vector<8x8xf32>
    %cst_32 = arith.constant dense<0.000000e+00> : vector<8x384xf32>
    %35 = tpu.matmul %34, %32, %cst_32 {dimension_numbers = #tpu.dot_dimension_numbers<[1], [0], [0], [1], [0, 0, 1, 1], [], []>} : vector<8x8xf32>, vector<8x384xf32>, vector<8x384xf32> -> vector<8x384xf32>
    %36 = arith.addf %30, %35 : vector<8x384xf32>
    %c0_33 = arith.constant 0 : index
    %c0_34 = arith.constant 0 : index
    %c36 = arith.constant 36 : index
    %37 = vector.load %arg2[%c0_33, %c0_34, %c36] : memref<1x8x512xf32, #tpu.memory_space<vmem>>, vector<1x8x384xf32>
    %38 = vector.shape_cast %37 : vector<1x8x384xf32> to vector<8x384xf32>
    %c6 = arith.constant 6 : index
    %c0_35 = arith.constant 0 : index
    %c0_36 = arith.constant 0 : index
    %39 = vector.load %arg3[%c6, %c0_35, %c0_36] : memref<9x8x8xf32, #tpu.memory_space<vmem>>, vector<1x8x8xf32>
    %40 = vector.shape_cast %39 : vector<1x8x8xf32> to vector<8x8xf32>
    %cst_37 = arith.constant dense<0.000000e+00> : vector<8x384xf32>
    %41 = tpu.matmul %40, %38, %cst_37 {dimension_numbers = #tpu.dot_dimension_numbers<[1], [0], [0], [1], [0, 0, 1, 1], [], []>} : vector<8x8xf32>, vector<8x384xf32>, vector<8x384xf32> -> vector<8x384xf32>
    %42 = arith.addf %36, %41 : vector<8x384xf32>
    %c0_38 = arith.constant 0 : index
    %c0_39 = arith.constant 0 : index
    %c37 = arith.constant 37 : index
    %43 = vector.load %arg2[%c0_38, %c0_39, %c37] : memref<1x8x512xf32, #tpu.memory_space<vmem>>, vector<1x8x384xf32>
    %44 = vector.shape_cast %43 : vector<1x8x384xf32> to vector<8x384xf32>
    %c7 = arith.constant 7 : index
    %c0_40 = arith.constant 0 : index
    %c0_41 = arith.constant 0 : index
    %45 = vector.load %arg3[%c7, %c0_40, %c0_41] : memref<9x8x8xf32, #tpu.memory_space<vmem>>, vector<1x8x8xf32>
    %46 = vector.shape_cast %45 : vector<1x8x8xf32> to vector<8x8xf32>
    %cst_42 = arith.constant dense<0.000000e+00> : vector<8x384xf32>
    %47 = tpu.matmul %46, %44, %cst_42 {dimension_numbers = #tpu.dot_dimension_numbers<[1], [0], [0], [1], [0, 0, 1, 1], [], []>} : vector<8x8xf32>, vector<8x384xf32>, vector<8x384xf32> -> vector<8x384xf32>
    %48 = arith.addf %42, %47 : vector<8x384xf32>
    %c0_43 = arith.constant 0 : index
    %c0_44 = arith.constant 0 : index
    %c38 = arith.constant 38 : index
    %49 = vector.load %arg2[%c0_43, %c0_44, %c38] : memref<1x8x512xf32, #tpu.memory_space<vmem>>, vector<1x8x384xf32>
    %50 = vector.shape_cast %49 : vector<1x8x384xf32> to vector<8x384xf32>
    %c8 = arith.constant 8 : index
    %c0_45 = arith.constant 0 : index
    %c0_46 = arith.constant 0 : index
    %51 = vector.load %arg3[%c8, %c0_45, %c0_46] : memref<9x8x8xf32, #tpu.memory_space<vmem>>, vector<1x8x8xf32>
    %52 = vector.shape_cast %51 : vector<1x8x8xf32> to vector<8x8xf32>
    %cst_47 = arith.constant dense<0.000000e+00> : vector<8x384xf32>
    %53 = tpu.matmul %52, %50, %cst_47 {dimension_numbers = #tpu.dot_dimension_numbers<[1], [0], [0], [1], [0, 0, 1, 1], [], []>} : vector<8x8xf32>, vector<8x384xf32>, vector<8x384xf32> -> vector<8x384xf32>
    %54 = arith.addf %48, %53 : vector<8x384xf32>
    %cst_48 = arith.constant 0.000000e+00 : f32
    %55 = vector.broadcast %cst_48 : f32 to vector<8x384xf32>
    %56 = arith.maximumf %54, %55 : vector<8x384xf32>
    %c0_49 = arith.constant 0 : index
    %c0_50 = arith.constant 0 : index
    %c0_51 = arith.constant 0 : index
    %57 = vector.load %arg4[%c0_49, %c0_50, %c0_51] : memref<1x8x384xf32, #tpu.memory_space<vmem>>, vector<1x8x384xf32>
    %58 = vector.shape_cast %57 : vector<1x8x384xf32> to vector<8x384xf32>
    %59 = vector.shape_cast %56 : vector<8x384xf32> to vector<1x8x384xf32>
    tpu.vector_store %arg4[%c0_49, %c0_50, %c0_51], %59 {strides = array<i32>} : memref<1x8x384xf32, #tpu.memory_space<vmem>>, vector<1x8x384xf32>,
    return
  }
  func.func @transform_0(%arg0: i32, %arg1: i32) -> (i32, i32, i32) {
    %c0_i32 = arith.constant 0 : i32
    %c0_i32_0 = arith.constant 0 : i32
    %c0_i32_1 = arith.constant 0 : i32
    return %arg0, %c0_i32, %c0_i32_0 : i32, i32, i32
  }
  func.func @transform_1(%arg0: i32, %arg1: i32) -> (i32, i32, i32) {
    %c0_i32 = arith.constant 0 : i32
    %c0_i32_0 = arith.constant 0 : i32
    %c0_i32_1 = arith.constant 0 : i32
    return %c0_i32, %arg1, %c0_i32_0 : i32, i32, i32
  }
  func.func @transform_2(%arg0: i32, %arg1: i32) -> (i32, i32, i32) {
    %c0_i32 = arith.constant 0 : i32
    %c0_i32_0 = arith.constant 0 : i32
    return %arg0, %arg1, %c0_i32 : i32, i32, i32
  }
}

</mosaic_0001>

<bundles_post_ra>
// kernel: tpu_custom_call.1
= control target key start
LH: loop header
LB: loop body
LE: loop exit
PB: predicated region body
PF: predicated region fallthrough
CT: control target
= control target key end

     0   :  { %7 = vsyncpa [#allocation3], 0  ;;  %s2267_s0 = inlined_call_operand.vmem [shape: f32[2,8,512], index: 0, kind: input, shape index: {}]   ;;  %s2268_s1 = inlined_call_operand.vmem [shape: f32[9,8,8], index: 1, kind: input, shape index: {}]   ;;  %s2269_s2 = inlined_call_operand.hbm [shape: f32[2,8,384], index: 2, kind: output, shape index: {}]  }
   0x1   :  { %9 = vsyncpa [#allocation3 + $0x1], 0  ;;  %s2053_s9 = smov 0   ;;  %s2055_s10 = smov 0  }
   0x2   :  { %s2057_s11 = smov 0   ;;  %s2059_s12 = smov 0  }
   0x3   :  { %s2061_s13 = smov 0   ;;  %s2063_s14 = smov 0  }
   0x4 LB: > { %s1747_s15 = sadd.s32 4294967295, %s2025_s14   ;;  %s1748_s16 = sadd.s32 4294967294, %s2025_s14   ;;  %s2025_s14 = sphi %s2063_s14, %s15_s14   ;;  %s2021_s13 = sphi %s2061_s13, %s2276_s13   ;;  %s2017_s12 = sphi %s2059_s12, %s2275_s12   ;;  %s2013_s11 = sphi %s2057_s11, %s2274_s11   ;;  %s2009_s10 = sphi %s2055_s10, %s2273_s10   ;;  %s2005_s9 = sphi %s2053_s9, %s2272_s9  }
   0x5   : > { %s27_s17 = sadd.s32 1, %s2021_s13  ;;  %s88_s18 = sadd.s32 1, %s2013_s11 }
   0x6   : > { %p29_p0 = scmp.ge.s32.totalorder %s27_s17, 2  ;;  %p98_p1 = scmp.ne.s32.totalorder %s2013_s11, %s2009_s10 }
   0x7   : > { %p99_p2 = scmp.eq.s32.totalorder %s1747_s15, 1  ;;  %p104_p3 = scmp.ne.s32.totalorder %s2009_s10, %s2005_s9 }
   0x8   : > { %s2278_s17 = smov (%p29_p0, %s27_s17), 0  ;;  %p105_p5 = scmp.eq.s32.totalorder %s1748_s16, 1 }
   0x9   : > { %p2093_p4 = por %p99_p2, %p98_p1  ;;  %s83_s20 = ssub.s32 %s2021_s13, %s2278_s17 }
   0xa   : > { %p1752_p6 = scmp.ge.s32.totalorder %s2025_s14, 1  ;;  %p86_p7 = scmp.eq.s32.totalorder %s83_s20, 0 }
   0xb   : > { %p2100_p8 = por %p105_p5, %p104_p3  ;;  %p138_p9 = scmp.lt.s32.totalorder %s2025_s14, 3 }
   0xc   : > { %s2106_s22 = scalar_select %p86_p7, %s2013_s11, %s88_s18  }
   0xd   : > { %p139_p10 = pnand %p1752_p6, %p138_p9 }
   0xe   : > { %p164_p11 = scmp.lt.s32.totalorder (!%p139_p10), %s2017_s12, 1  ;;  %v2027_v0 = vmov (!%p139_p10), 0.0   ;;  %vm2028_vm0 = vmmov (!%p139_p10), 0   ;;  %s2029_s28 = smov (!%p139_p10), 127   ;;  %vm195_vm1 = vcmask (!%p139_p10), 1039360   ;;  %v1755_v9 = vld [vmem:[%s2268_s1 + $0x8] sm:$0xff] (!%p139_p10) }
   0xf   : > { %142 = sbr.rel (%p139_p10) target bundleno = 442 (0x1ba), region = 28  ;;  %1803 = vmatprep.subr.mxu1 (!%p139_p10), %v2027_v0  ;;  %1805 = vmatprep.mubr.msk.f32.mxu1 (!%p139_p10), %vm2028_vm0, %v2027_v0  ;;  %s2030_s29 = smov (!%p139_p10), 126   ;;  %vm202_vm2 = vcmask (!%p139_p10), 64512   ;;  %vm501_vm3 = vcmask (!%p139_p10), 1031168   ;;  %v176_v18 = vld [vmem:[%s2268_s1] sm:$0xff] (!%p139_p10)  ;;  %vm665_vm4 = vcmask (!%p139_p10), 900096  }
  0x10   : > { %270 = vmatprep.mubr.f32.mxu0 (!%p139_p10), %v2027_v0  ;;  %s2031_s30 = smov (!%p139_p10), 110   ;;  %s2032_s3 = smov (!%p139_p10), 109   ;;  %v1760_v26 = vld [vmem:[%s2268_s1 + $0x10] sm:$0xff] (!%p139_p10)  ;;  %vm829_vm5 = vcmask (!%p139_p10), 891904   ;;  %v1763_v34 = vld [vmem:[%s2268_s1 + $0x18] sm:$0xff] (!%p139_p10)  ;;  %vm993_vm6 = vcmask (!%p139_p10), 883712  }
  0x11   : > { %s2033_s4 = smov (!%p139_p10), 108   ;;  %s2034_s5 = smov (!%p139_p10), 92   ;;  %v1766_v42 = vld [vmem:[%s2268_s1 + $0x20] sm:$0xff] (!%p139_p10)  ;;  %vm1157_vm7 = vcmask (!%p139_p10), 752640   ;;  %v1769_v50 = vld [vmem:[%s2268_s1 + $0x28] sm:$0xff] (!%p139_p10)  ;;  %vm1321_vm8 = vcmask (!%p139_p10), 744448  }
  0x12   : > { %s2035_s6 = smov (!%p139_p10), 91   ;;  %s2036_s7 = smov (!%p139_p10), 90   ;;  %v1772_v58 = vld [vmem:[%s2268_s1 + $0x30] sm:$0xff] (!%p139_p10)  ;;  %vm1485_vm9 = vcmask (!%p139_p10), 736256  }
  0x13   : > { %s161_s8 = sand.u32 (!%p139_p10), 1, %s2009_s10   ;;  %s1881_s16 = smul.u32 (!%p139_p10), 384, %s2017_s12 }
  0x14   : > { %s1880_s15 = smul.u32 (!%p139_p10), 24, %s161_s8 }
  0x15   : > { %s2220_s25 = scalar_lea.hbm (!%p139_p10), %s2269_s2, %s1881_s16 }
  0x16   : > { %s165_s23 = scalar_select %p164_p11, %s2017_s12, 1 }
  0x17   : > { %s163_s18 = scalar_lea.vmem [#allocation2], %s1880_s15  ;;  %s1646_s12 = scalar_lea.sflag [#allocation3], %s161_s8 }
  0x18   : > { %s1784_s24 = sshll.u32 %s165_s23, 5  ;;  %s1662_s20 = sshll.u32 %s163_s18, 4  ;;  %s2222_s20 = int_to_ptr.vmem [resolvable:$true] %s1662_s20 }
  0x19   : > { %s168_s27 = scalar_lea.vmem %s2267_s0, %s1784_s24  ;;  %s1947_s26 = scalar_lea.vmem %s2222_s20, 384 }
  0x1a   : > { %v178_v1 = vld [vmem:[%s168_s27 + $0x8] sm:$0xff]  ;;  %v177_v2 = vld [vmem:[%s168_s27] sm:$0xff]  ;;  %v179_v3 = vld [vmem:[%s168_s27 + $0x10] sm:$0xff]  ;;  %p1948_p12 = scmp.ne.s32.totalorder %s2222_s20, %s1947_s26 }
  0x1b   : > { %189 = vrot.lane.b32.xlu0 %v178_v1, %s2029_s28  ;;  %187 = vrot.lane.b32.xlu1 %v177_v2, %s2029_s28  ;;  %v180_v4 = vld [vmem:[%s168_s27 + $0x18] sm:$0xff]  ;;  %s2037_s27 = smov [#allocation2]  }
  0x1c   : > { %p1949_p13 = pnand %p1948_p12, %p2093_p4 }
  0x1e   : > { %p1950_p0 = pneg %p1949_p13 }
  0x1f   : > { %191 = vrot.lane.b32.xlu0 %v179_v3, %s2029_s28  ;;  %193 = vrot.lane.b32.xlu1 %v180_v4, %s2029_s28  ;;  %s1951_s28 = sshll.u32 %s2037_s27, 4  ;;  %s1952_s28 = int_to_ptr.vmem [resolvable:$false] %s1951_s28 }
  0x20   : > { %p1954_p1 = scmp.lt.s32.totalorder %s2222_s20, %s1952_s28 }
  0x23   : > { %495 = vrot.lane.b32.xlu0 %v178_v1, %s2030_s29  ;;  %497 = vrot.lane.b32.xlu1 %v179_v3, %s2030_s29 }
  0x27   : > { %493 = vrot.lane.b32.xlu0 %v177_v2, %s2030_s29  ;;  %499 = vrot.lane.b32.xlu1 %v180_v4, %s2030_s29  ;;  %s1953_s29 = scalar_lea.vmem %s1952_s28, 768 }
  0x28   : > { %p1955_p2 = scmp.lt.s32.totalorder %s1953_s29, %s1947_s26 }
  0x2a   : > { %p1956_p3 = por %p1955_p2, %p1954_p1 }
  0x2b   : > { %659 = vrot.lane.b32.xlu0 %v178_v1, %s2031_s30  ;;  %661 = vrot.lane.b32.xlu1 %v179_v3, %s2031_s30 }
  0x2c   : > { %p1957_p5 = pnand %p1956_p3, %p1950_p0 }
  0x2f   : > { %657 = vrot.lane.b32.xlu0 %v177_v2, %s2031_s30  ;;  %663 = vrot.lane.b32.xlu1 %v180_v4, %s2031_s30 }
  0x33   : > { %823 = vrot.lane.b32.xlu0 %v178_v1, %s2032_s3  ;;  %825 = vrot.lane.b32.xlu1 %v179_v3, %s2032_s3 }
  0x37   : > { %821 = vrot.lane.b32.xlu0 %v177_v2, %s2032_s3  ;;  %827 = vrot.lane.b32.xlu1 %v180_v4, %s2032_s3 }
  0x3b   : > { %987 = vrot.lane.b32.xlu0 %v178_v1, %s2033_s4  ;;  %989 = vrot.lane.b32.xlu1 %v179_v3, %s2033_s4 }
  0x3f   : > { %985 = vrot.lane.b32.xlu0 %v177_v2, %s2033_s4  ;;  %991 = vrot.lane.b32.xlu1 %v180_v4, %s2033_s4 }
  0x43   : > { %1151 = vrot.lane.b32.xlu0 %v178_v1, %s2034_s5  ;;  %1153 = vrot.lane.b32.xlu1 %v179_v3, %s2034_s5 }
  0x47   : > { %1149 = vrot.lane.b32.xlu0 %v177_v2, %s2034_s5  ;;  %1155 = vrot.lane.b32.xlu1 %v180_v4, %s2034_s5 }
  0x4b   : > { %1315 = vrot.lane.b32.xlu0 %v178_v1, %s2035_s6  ;;  %1317 = vrot.lane.b32.xlu1 %v179_v3, %s2035_s6 }
  0x4f   : > { %1313 = vrot.lane.b32.xlu0 %v177_v2, %s2035_s6  ;;  %1319 = vrot.lane.b32.xlu1 %v180_v4, %s2035_s6 }
  0x53   : > { %1479 = vrot.lane.b32.xlu0 %v178_v1, %s2036_s7  ;;  %1481 = vrot.lane.b32.xlu1 %v179_v3, %s2036_s7 }
  0x57   : > { %1477 = vrot.lane.b32.xlu0 %v177_v2, %s2036_s7  ;;  %1483 = vrot.lane.b32.xlu1 %v180_v4, %s2036_s7 }
  0x8d   : > { %v190_v5 = vpop.permute.xlu0 %189  ;;  %v188_v6 = vpop.permute.xlu1 %187 }
  0x8e   : > { %v196_v12 = vsel %vm195_vm1, %v188_v6, %v190_v5  ;;  %v1778_v6 = vld [vmem:[%s2268_s1 + $0x40] sm:$0xff] }
  0x91   : > { %v192_v7 = vpop.permute.xlu0 %191  ;;  %v194_v8 = vpop.permute.xlu1 %193 }
  0x92   : > { %v197_v10 = vsel %vm195_vm1, %v190_v5, %v192_v7  ;;  %v198_v11 = vsel %vm195_vm1, %v192_v7, %v194_v8 }
  0x93   : > { %206 = vmatprep.subr.mxu0 %v197_v10  ;;  %1804 = vmatpush3.msra.mxu1 %v198_v11 }
  0x94   : > { %207 = vmatpush1.msra.mxu0 %v196_v12  ;;  %1806 = vmatmul.mubr.msk.f32.vlgmr.msra.gmra.mrb[0].mxu1 %vm202_vm2, %v1755_v9 }
  0x95   : > { %v496_v13 = vpop.permute.xlu0 %495  ;;  %1756 = vmatmul.mubr.msk.f32.vlgmr.msra.gmra.mrb[0].mxu0 %vm202_vm2, %v1755_v9  ;;  %v498_v14 = vpop.permute.xlu1 %497  ;;  %350 = vmatprep.subr.mxu0 %v178_v1 }
  0x96   : > { %351 = vmatpush1.msra.mxu0 %v177_v2  ;;  %1808 = vmatprep.subr.mxu1 %v2027_v0  ;;  %v503_v15 = vsel %vm501_vm3, %v496_v13, %v498_v14 }
  0x97   : > { %1809 = vmatpush3.msra.mxu1 %v179_v3  ;;  %511 = vmatprep.subr.mxu0 %v503_v15  ;;  %v1775_v3 = vld [vmem:[%s2268_s1 + $0x38] sm:$0xff] }
  0x98   : > { %1810 = vmatprep.mubr.msk.f32.mxu1 %vm2028_vm0, %v2027_v0  ;;  %1813 = vmatprep.subr.mxu1 %v2027_v0 }
  0x99   : > { %v494_v16 = vpop.permute.xlu0 %493  ;;  %v500_v17 = vpop.permute.xlu1 %499  ;;  %414 = vmatprep.mubr.f32.mxu0 %v2027_v0 }
  0x9a   : > { %v504_v19 = vsel %vm501_vm3, %v498_v14, %v500_v17  ;;  %v502_v20 = vsel %vm501_vm3, %v494_v16, %v496_v13 }
  0x9c   : > { %1811 = vmatmul.mubr.msk.f32.vlgmr.msra.gmra.mrb[0].mxu1 %vm202_vm2, %v176_v18 }
  0x9d   : > { %1814 = vmatpush3.msra.mxu1 %v504_v19  ;;  %v660_v21 = vpop.permute.xlu0 %659  ;;  %v662_v22 = vpop.permute.xlu1 %661  ;;  %1758 = vmatmul.mubr.msk.f32.vlgmr.msra.gmra.mrb[0].mxu0 %vm202_vm2, %v176_v18 }
  0x9e   : > { %512 = vmatpush1.msra.mxu0 %v502_v20  ;;  %v667_v23 = vsel %vm665_vm4, %v660_v21, %v662_v22  ;;  %1815 = vmatprep.mubr.msk.f32.mxu1 %vm2028_vm0, %v2027_v0 }
  0x9f   : > { %675 = vmatprep.subr.mxu0 %v667_v23  ;;  %1818 = vmatprep.subr.mxu1 %v2027_v0 }
  0xa0   : > { %575 = vmatprep.mubr.f32.mxu0 %v2027_v0 }
  0xa1   : > { %v658_v24 = vpop.permute.xlu0 %657  ;;  %v664_v25 = vpop.permute.xlu1 %663 }
  0xa2   : > { %v668_v27 = vsel %vm665_vm4, %v662_v22, %v664_v25  ;;  %v666_v28 = vsel %vm665_vm4, %v658_v24, %v660_v21 }
  0xa4   : > { %1816 = vmatmul.mubr.msk.f32.vlgmr.msra.gmra.mrb[0].mxu1 %vm202_vm2, %v1760_v26 }
  0xa5   : > { %1819 = vmatpush3.msra.mxu1 %v668_v27  ;;  %v824_v29 = vpop.permute.xlu0 %823  ;;  %v826_v30 = vpop.permute.xlu1 %825  ;;  %1761 = vmatmul.mubr.msk.f32.vlgmr.msra.gmra.mrb[0].mxu0 %vm202_vm2, %v1760_v26 }
  0xa6   : > { %676 = vmatpush1.msra.mxu0 %v666_v28  ;;  %v831_v31 = vsel %vm829_vm5, %v824_v29, %v826_v30  ;;  %1820 = vmatprep.mubr.msk.f32.mxu1 %vm2028_vm0, %v2027_v0 }
  0xa7   : > { %839 = vmatprep.subr.mxu0 %v831_v31  ;;  %1823 = vmatprep.subr.mxu1 %v2027_v0 }
  0xa8   : > { %739 = vmatprep.mubr.f32.mxu0 %v2027_v0 }
  0xa9   : > { %v822_v32 = vpop.permute.xlu0 %821  ;;  %v828_v33 = vpop.permute.xlu1 %827 }
  0xaa   : > { %v832_v35 = vsel %vm829_vm5, %v826_v30, %v828_v33  ;;  %v830_v36 = vsel %vm829_vm5, %v822_v32, %v824_v29 }
  0xac   : > { %1821 = vmatmul.mubr.msk.f32.vlgmr.msra.gmra.mrb[0].mxu1 %vm202_vm2, %v1763_v34 }
  0xad   : > { %1824 = vmatpush3.msra.mxu1 %v832_v35  ;;  %v988_v37 = vpop.permute.xlu0 %987  ;;  %v990_v38 = vpop.permute.xlu1 %989  ;;  %1764 = vmatmul.mubr.msk.f32.vlgmr.msra.gmra.mrb[0].mxu0 %vm202_vm2, %v1763_v34 }
  0xae   : > { %840 = vmatpush1.msra.mxu0 %v830_v36  ;;  %v995_v39 = vsel %vm993_vm6, %v988_v37, %v990_v38  ;;  %1825 = vmatprep.mubr.msk.f32.mxu1 %vm2028_vm0, %v2027_v0 }
  0xaf   : > { %1003 = vmatprep.subr.mxu0 %v995_v39  ;;  %1828 = vmatprep.subr.mxu1 %v2027_v0 }
  0xb0   : > { %903 = vmatprep.mubr.f32.mxu0 %v2027_v0 }
  0xb1   : > { %v986_v40 = vpop.permute.xlu0 %985  ;;  %v992_v41 = vpop.permute.xlu1 %991 }
  0xb2   : > { %v996_v43 = vsel %vm993_vm6, %v990_v38, %v992_v41  ;;  %v994_v44 = vsel %vm993_vm6, %v986_v40, %v988_v37 }
  0xb4   : > { %1826 = vmatmul.mubr.msk.f32.vlgmr.msra.gmra.mrb[0].mxu1 %vm202_vm2, %v1766_v42 }
  0xb5   : > { %1829 = vmatpush3.msra.mxu1 %v996_v43  ;;  %v1152_v45 = vpop.permute.xlu0 %1151  ;;  %v1154_v46 = vpop.permute.xlu1 %1153  ;;  %1767 = vmatmul.mubr.msk.f32.vlgmr.msra.gmra.mrb[0].mxu0 %vm202_vm2, %v1766_v42 }
  0xb6   : > { %1004 = vmatpush1.msra.mxu0 %v994_v44  ;;  %v1159_v47 = vsel %vm1157_vm7, %v1152_v45, %v1154_v46  ;;  %1830 = vmatprep.mubr.msk.f32.mxu1 %vm2028_vm0, %v2027_v0 }
  0xb7   : > { %1167 = vmatprep.subr.mxu0 %v1159_v47  ;;  %1833 = vmatprep.subr.mxu1 %v2027_v0 }
  0xb8   : > { %1067 = vmatprep.mubr.f32.mxu0 %v2027_v0 }
  0xb9   : > { %v1150_v48 = vpop.permute.xlu0 %1149  ;;  %v1156_v49 = vpop.permute.xlu1 %1155 }
  0xba   : > { %v1160_v51 = vsel %vm1157_vm7, %v1154_v46, %v1156_v49  ;;  %v1158_v52 = vsel %vm1157_vm7, %v1150_v48, %v1152_v45 }
  0xbc   : > { %1831 = vmatmul.mubr.msk.f32.vlgmr.msra.gmra.mrb[0].mxu1 %vm202_vm2, %v1769_v50 }
  0xbd   : > { %1834 = vmatpush3.msra.mxu1 %v1160_v51  ;;  %v1316_v53 = vpop.permute.xlu0 %1315  ;;  %v1318_v54 = vpop.permute.xlu1 %1317  ;;  %1770 = vmatmul.mubr.msk.f32.vlgmr.msra.gmra.mrb[0].mxu0 %vm202_vm2, %v1769_v50 }
  0xbe   : > { %1168 = vmatpush1.msra.mxu0 %v1158_v52  ;;  %v1323_v55 = vsel %vm1321_vm8, %v1316_v53, %v1318_v54  ;;  %1835 = vmatprep.mubr.msk.f32.mxu1 %vm2028_vm0, %v2027_v0 }
  0xbf   : > { %1331 = vmatprep.subr.mxu0 %v1323_v55  ;;  %1838 = vmatprep.subr.mxu1 %v2027_v0 }
  0xc0   : > { %1231 = vmatprep.mubr.f32.mxu0 %v2027_v0 }
  0xc1   : > { %v1314_v56 = vpop.permute.xlu0 %1313  ;;  %v1320_v57 = vpop.permute.xlu1 %1319 }
  0xc2   : > { %v1324_v59 = vsel %vm1321_vm8, %v1318_v54, %v1320_v57  ;;  %v1322_v60 = vsel %vm1321_vm8, %v1314_v56, %v1316_v53 }
  0xc4   : > { %1836 = vmatmul.mubr.msk.f32.vlgmr.msra.gmra.mrb[0].mxu1 %vm202_vm2, %v1772_v58 }
  0xc5   : > { %1839 = vmatpush3.msra.mxu1 %v1324_v59  ;;  %v1480_v61 = vpop.permute.xlu0 %1479  ;;  %v1482_v62 = vpop.permute.xlu1 %1481  ;;  %1773 = vmatmul.mubr.msk.f32.vlgmr.msra.gmra.mrb[0].mxu0 %vm202_vm2, %v1772_v58 }
  0xc6   : > { %1332 = vmatpush1.msra.mxu0 %v1322_v60  ;;  %v1487_v63 = vsel %vm1485_vm9, %v1480_v61, %v1482_v62  ;;  %1840 = vmatprep.mubr.msk.f32.mxu1 %vm2028_vm0, %v2027_v0 }
  0xc7   : > { %1495 = vmatprep.subr.mxu0 %v1487_v63  ;;  %1843 = vmatprep.subr.mxu1 %v2027_v0 }
  0xc8   : > { %1395 = vmatprep.mubr.f32.mxu0 %v2027_v0 }
  0xc9   : > { %v1478_v1 = vpop.permute.xlu0 %1477  ;;  %v1484_v2 = vpop.permute.xlu1 %1483 }
  0xca   : > { %v1488_v4 = vsel %vm1485_vm9, %v1482_v62, %v1484_v2  ;;  %v1486_v5 = vsel %vm1485_vm9, %v1478_v1, %v1480_v61 }
  0xcc   : > { %1841 = vmatmul.mubr.msk.f32.vlgmr.msra.gmra.mrb[0].mxu1 %vm202_vm2, %v1775_v3 }
  0xcd   : > { %1844 = vmatpush3.msra.mxu1 %v1488_v4  ;;  %1776 = vmatmul.mubr.msk.f32.vlgmr.msra.gmra.mrb[0].mxu0 %vm202_vm2, %v1775_v3 }
  0xce   : > { %1496 = vmatpush1.msra.mxu0 %v1486_v5  ;;  %1845 = vmatprep.mubr.msk.f32.mxu1 %vm2028_vm0, %v2027_v0 }
  0xcf   : > { %1559 = vmatprep.mubr.f32.mxu0 %v2027_v0 }
  0xd4   : > { %1846 = vmatmul.mubr.msk.f32.vlgmr.msra.gmra.mrb[0].mxu1 %vm202_vm2, %v1778_v6 }
  0xd5   : > { %1779 = vmatmul.mubr.msk.f32.vlgmr.msra.gmra.mrb[0].mxu0 %vm202_vm2, %v1778_v6 }
 0x1a7   : > { %v1632_v7 = vpop.f32.mrb[0].mxu1 }
 0x1a8   : > { %v1641_v8 = vmax.f32 %v1632_v7, 0.0  ;;  %v1561_v9 = vpop.f32.mrb[0].mxu0  ;;  %v1847_v10 = vpop.f32.mrb[1].mxu1 }
 0x1a9   : > { %v1639_v11 = vmax.f32 %v1561_v9, 0.0  ;;  %v1563_v0 = vpop.f32.mrb[1].mxu0 }
 0x1aa   : > { %1644 = vst [vmem:[%s163_s18 + $0x10] sm:$0xff] %v1641_v8  ;;  %v1640_v12 = vmax.f32 %v1563_v0, 0.0 }
 0x1ab   : > { %1642 = vst [vmem:[%s163_s18] sm:$0xff] %v1639_v11 }
 0x1ac   : > { %1643 = vst [vmem:[%s163_s18 + $0x8] sm:$0xff] %v1640_v12 }
 0x1ad   : > { %1960 = shalt.err (!%p1957_p5)
}
 0x1ae   : > { %s1961_s30 = scalar_lea.hbm %s2220_s25, 384  ;;  %s1965_s5 = scalar_lea.hbm %s2269_s2, 768 }
 0x1af   : > { %p1962_p6 = scmp.ne.s32.totalorder %s2220_s25, %s1961_s30  ;;  %p1966_p10 = scmp.lt.u32.totalorder %s2220_s25, %s2269_s2 }
 0x1b0   : > { %p1967_p11 = scmp.lt.u32.totalorder %s1965_s5, %s1961_s30  ;;  %p1969_p13 = scmp.lt.u32.totalorder %s1961_s30, %s2220_s25 }
 0x1b1   : > { %p1963_p7 = pnand %p1962_p6, %p2093_p4 }
 0x1b2   : > { %p1968_p12 = por %p1967_p11, %p1966_p10 }
 0x1b3   : > { %p1964_p9 = pneg %p1963_p7 }
 0x1b4   : > { %p1970_p0 = por %p1969_p13, %p1968_p12 }
 0x1b6   : > { %p1971_p1 = pnand %p1970_p0, %p1964_p9 }
 0x1b8   : > { %1974 = shalt.err (!%p1971_p1)
}
 0x1b9   : > { %1882 = dma.vmem_to_hbm [thread:$0]  (%p2093_p4), %s2222_s20, 384, %s2220_s25, %s1646_s12  }
 0x1ba PF: > { %p1888_p2 = scmp.ge.s32.totalorder %s2025_s14, 2  ;;  %s1674_s8 = sand.u32 1, %s2005_s9  }
 0x1bb   : > { %s1675_s15 = scalar_lea.sflag [#allocation3], %s1674_s8 }
 0x1bc   : > { %p1885_p3 = pnand %p1888_p2, %p2100_p8 }
 0x1be   : > { %2000 = dma.done.wait (!%p1885_p3), %s1675_s15, 384  }
 0x1bf   : > { %2002 = vsyncadd (!%p1885_p3), %s1675_s15, 4294966912  ;;  %s15_s14 = sadd.s32 1, %s2025_s14   ;;  %s2272_s9 = smov %s2009_s10 }
 0x1c0   : > { %p12_p5 = scmp.ge.s32.totalorder %s15_s14, 4   ;;  %s2273_s10 = smov %s2013_s11 }
 0x1c1   : > { %s2274_s11 = smov %s2106_s22  ;;  %s2275_s12 = smov %s2021_s13 }
 0x1c2   : > { %s2276_s13 = smov %s2278_s17  ;;  %14 = sbr.rel (!%p12_p5) target bundleno = 4 (0x4), region = 74 }
 0x1c9   :  { %1680 = vsyncpa [#allocation3], 1 }
 0x1ca   :  { %1682 = vsyncpa [#allocation3 + $0x1], 1 }

</bundles_post_ra>
